<compile_context>
chip_gen: v5e
topology: v5e:2x2
jax: 0.10.0
libtpu: 0.0.40
codegen_flags: <defaults>
</compile_context>

<pallas_src>
import jax
import jax.numpy as jnp
from jax.experimental import pallas as pl
from jax.experimental.pallas import tpu as pltpu


def _round_up(x: int, m: int) -> int:
    return ((x + m - 1) // m) * m


def _cdiv(a: int, b: int) -> int:
    return (a + b - 1) // b


def _vector_units_support_bf16() -> bool:
    """True on TPU generations with bf16 VPU/EUP (v6e, v7x); False on v5e/older."""
    try:
        kind = jax.devices()[0].device_kind.lower()
    except Exception:
        return False
    return ("v6" in kind) or ("v7" in kind) or ("7x" in kind)


def _make_vq_encoder_kernel(num_layers: int, compute_dtype, downcast_before_tanh: bool):
    """Fused [Linear -> Tanh] * num_layers on one (TM, feat) activation tile."""

    def kernel(*refs):
        x_ref = refs[0]
        o_ref = refs[-1]
        param_refs = refs[1:-1]  # interleaved (W, b), already in compute/f32 dtype

        h = x_ref[...]                           # (TM, K0), compute dtype
        for li in range(num_layers):
            w = param_refs[2 * li][...]          # (K_pad, N_pad), compute dtype
            b = param_refs[2 * li + 1][...]      # (1, N_pad), f32
            # MXU matmul with f32 accumulation; bias broadcast over batch rows.
            z = jnp.dot(h, w, preferred_element_type=jnp.float32) + b
            if downcast_before_tanh:
                # v6e/v7x: bf16 EUP halves tanh pushes and removes the VPU cast.
                h = jnp.tanh(z.astype(compute_dtype))
            else:
                # v5e (no bf16 EUP/VPU) or f32 compute: tanh in f32.
                h = jnp.tanh(z)
                if li < num_layers - 1:
                    h = h.astype(compute_dtype)  # operand dtype of next matmul
        o_ref[...] = h.astype(o_ref.dtype)

    return kernel


def vq_encoder_forward(x, params, *, tile_m: int = 1024,
                       compute_dtype=jnp.bfloat16,
                       min_rows_per_core: int = 256):
    """x: (batch, in_dim); params: list of (W (in, out), b (1, out)) tuples."""
    batch, in_dim = x.shape
    num_layers = len(params)
    out_dim = params[-1][0].shape[1]

    cdt = jnp.dtype(compute_dtype)
    # Packed sublane tile of the compute dtype: 8 rows (f32), 16 (bf16), 32 (8-bit).
    sub = {4: 8, 2: 16, 1: 32}[cdt.itemsize]

    # Feature sizes: K of layer 0 padded only to the sublane pack (the x stream
    # dominates HBM traffic and the MXU handles K < 128); every layer OUTPUT dim
    # padded to 128 so matmul N dims and the output store are lane-dense.
    feat = [in_dim] + [w.shape[1] for w, _ in params]
    feat_pad = [_round_up(feat[0], sub)] + [_round_up(d, 128) for d in feat[1:]]

    # Batch tiling: even out tile sizes rather than padding batch to a fixed tm,
    # and guarantee >=2 grid steps for sizeable batches so the "parallel" grid
    # axis can shard across both v7x TensorCores (gated so tiny batches don't
    # pay extra per-step overhead).
    num_tiles = max(1, _cdiv(batch, tile_m))
    if num_tiles == 1 and batch >= 2 * min_rows_per_core:
        num_tiles = 2
    tm = _round_up(_cdiv(batch, num_tiles), sub)
    batch_pad = tm * num_tiles

    # Zero-pad input and params once, in the compute dtype (bias stays f32 --
    # it is added to the f32 MXU accumulator).
    x_p = jnp.zeros((batch_pad, feat_pad[0]), compute_dtype)
    x_p = x_p.at[:batch, :in_dim].set(x.astype(compute_dtype))

    flat_params = []
    for li, (w, b) in enumerate(params):
        kp, npad = feat_pad[li], feat_pad[li + 1]
        w_p = jnp.zeros((kp, npad), compute_dtype)
        w_p = w_p.at[: w.shape[0], : w.shape[1]].set(w.astype(compute_dtype))
        b_p = jnp.zeros((1, npad), jnp.float32)
        b_p = b_p.at[:, : b.shape[1]].set(b.astype(jnp.float32))
        flat_params += [w_p, b_p]

    downcast_before_tanh = cdt.itemsize < 4 and _vector_units_support_bf16()
    kernel = _make_vq_encoder_kernel(num_layers, compute_dtype, downcast_before_tanh)

    # Activation tile streams over the batch grid (auto double-buffered);
    # weights/biases use constant index_maps so they are fetched once and stay
    # resident in VMEM across grid steps.  (At multi-thousand feature dims the
    # resident W specs could also be single-buffered via pipeline_mode to halve
    # their VMEM footprint on v7x; irrelevant at VQEncoder-scale weights.)
    in_specs = [pl.BlockSpec((tm, feat_pad[0]), lambda i: (i, 0))]
    for li in range(num_layers):
        kp, npad = feat_pad[li], feat_pad[li + 1]
        in_specs.append(pl.BlockSpec((kp, npad), lambda i: (0, 0)))   # W resident
        in_specs.append(pl.BlockSpec((1, npad), lambda i: (0, 0)))    # b resident
    out_spec = pl.BlockSpec((tm, feat_pad[-1]), lambda i: (i, 0))

    # Explicit VMEM budget: streamed tiles (double-buffered) + params (worst
    # case double-buffered) + f32 intermediate headroom; clamp to v7x's 64 MiB.
    out_itemsize = jnp.dtype(x.dtype).itemsize
    param_bytes = sum(int(p.size) * p.dtype.itemsize for p in flat_params)
    vmem_est = (2 * tm * feat_pad[0] * cdt.itemsize
                + 2 * tm * feat_pad[-1] * out_itemsize
                + 2 * param_bytes
                + 4 * tm * max(feat_pad) * 4)
    vmem_limit = int(min(max(2 * vmem_est, 32 << 20), 64 << 20))

    out_padded = pl.pallas_call(
        kernel,
        out_shape=jax.ShapeDtypeStruct((batch_pad, feat_pad[-1]), x.dtype),
        grid_spec=pltpu.PrefetchScalarGridSpec(
            num_scalar_prefetch=0,
            grid=(num_tiles,),
            in_specs=in_specs,
            out_specs=out_spec,
        ),
        compiler_params=pltpu.CompilerParams(
            dimension_semantics=("parallel",),   # megacore sharding on v7x
            vmem_limit_bytes=vmem_limit,
        ),
    )(x_p, *flat_params)

    # Strip batch/feature padding.
    return out_padded[:batch, :out_dim]


def vq_encoder_reference(x, params):
    h = x.astype(jnp.float32)
    for w, b in params:
        h = jnp.tanh(h @ w.astype(jnp.float32) + b.astype(jnp.float32))
    return h.astype(x.dtype)


def init_params(key, in_dim, out_dim, scale=0.1):
    """VQEncoder layer sizes: in_dim -> out_dim // 2 -> out_dim."""
    sizes = [in_dim, out_dim // 2, out_dim]
    params = []
    for j in range(len(sizes) - 1):
        key, kw, kb = jax.random.split(key, 3)
        w = scale * jax.random.normal(kw, (sizes[j], sizes[j + 1]), dtype=jnp.float32)
        b = scale * jax.random.normal(kb, (1, sizes[j + 1]), dtype=jnp.float32)
        params.append((w, b))
    return params


if __name__ == "__main__":
    # Small shapes consistent with VQEncoder(in_dim, out_dim).
    batch = 16
    in_dim = 32
    out_dim = 16

    key = jax.random.PRNGKey(0)
    key, kx = jax.random.split(key)
    x = jax.random.normal(kx, (batch, in_dim), dtype=jnp.float32)
    params = init_params(key, in_dim, out_dim)

    ref = vq_encoder_reference(x, params)

    # Default path: bf16 streamed activations / weights, f32 accumulation.
    out_bf16 = jax.block_until_ready(vq_encoder_forward(x, params))
    assert out_bf16.shape == (batch, out_dim), out_bf16.shape
    assert jnp.allclose(out_bf16, ref, atol=5e-2, rtol=5e-2), (
        float(jnp.max(jnp.abs(out_bf16 - ref)))
    )

    # Full f32 compute path (tight numeric check; also the v5e elementwise path).
    out_f32 = jax.block_until_ready(
        vq_encoder_forward(x, params, compute_dtype=jnp.float32)
    )
    assert out_f32.shape == (batch, out_dim), out_f32.shape
    assert jnp.allclose(out_f32, ref, atol=1e-3, rtol=1e-3), (
        float(jnp.max(jnp.abs(out_f32 - ref)))
    )

    print("KERNEL_OK")
</pallas_src>

<mosaic_0001>
module attributes {stable_mosaic.version = 11 : i64} {
  func.func @kernel(%arg0: i32, %arg1: memref<16x32xbf16, #tpu.memory_space<vmem>>, %arg2: memref<32x128xbf16, #tpu.memory_space<vmem>>, %arg3: memref<1x128xf32, #tpu.memory_space<vmem>>, %arg4: memref<128x128xbf16, #tpu.memory_space<vmem>>, %arg5: memref<1x128xf32, #tpu.memory_space<vmem>>, %arg6: memref<16x128xf32, #tpu.memory_space<vmem>>) attributes {dimension_semantics = [#tpu.dimension_semantics<parallel>], iteration_bounds = array<i64: 1>, scalar_prefetch = 0 : i64, scratch_operands = 0 : i64, tpu.core_type = #tpu.core_type<tc>, window_params = [{transform_indices = @transform_0, window_bounds = array<i64: 16, 32>}, {pipeline_mode = #tpu.pipeline_mode<synchronous>, transform_indices = @transform_1, window_bounds = array<i64: 32, 128>}, {pipeline_mode = #tpu.pipeline_mode<synchronous>, transform_indices = @transform_2, window_bounds = array<i64: 1, 128>}, {pipeline_mode = #tpu.pipeline_mode<synchronous>, transform_indices = @transform_3, window_bounds = array<i64: 128, 128>}, {pipeline_mode = #tpu.pipeline_mode<synchronous>, transform_indices = @transform_4, window_bounds = array<i64: 1, 128>}, {transform_indices = @transform_5, window_bounds = array<i64: 16, 128>}]} {
    %c0 = arith.constant 0 : index
    %c0_0 = arith.constant 0 : index
    %0 = vector.load %arg1[%c0, %c0_0] : memref<16x32xbf16, #tpu.memory_space<vmem>>, vector<16x32xbf16>
    %c0_1 = arith.constant 0 : index
    %c0_2 = arith.constant 0 : index
    %1 = vector.load %arg2[%c0_1, %c0_2] : memref<32x128xbf16, #tpu.memory_space<vmem>>, vector<32x128xbf16>
    %c0_3 = arith.constant 0 : index
    %c0_4 = arith.constant 0 : index
    %2 = vector.load %arg3[%c0_3, %c0_4] : memref<1x128xf32, #tpu.memory_space<vmem>>, vector<1x128xf32>
    %cst = arith.constant dense<0.000000e+00> : vector<16x128xf32>
    %3 = tpu.matmul %0, %1, %cst {dimension_numbers = #tpu.dot_dimension_numbers<[1], [0], [0], [1], [0, 0, 1, 1], [], []>} : vector<16x32xbf16>, vector<32x128xbf16>, vector<16x128xf32> -> vector<16x128xf32>
    %4 = vector.broadcast %2 : vector<1x128xf32> to vector<16x128xf32>
    %5 = arith.addf %3, %4 : vector<16x128xf32>
    %6 = math.tanh %5 : vector<16x128xf32>
    %7 = arith.truncf %6 : vector<16x128xf32> to vector<16x128xbf16>
    %c0_5 = arith.constant 0 : index
    %c0_6 = arith.constant 0 : index
    %8 = vector.load %arg4[%c0_5, %c0_6] : memref<128x128xbf16, #tpu.memory_space<vmem>>, vector<128x128xbf16>
    %c0_7 = arith.constant 0 : index
    %c0_8 = arith.constant 0 : index
    %9 = vector.load %arg5[%c0_7, %c0_8] : memref<1x128xf32, #tpu.memory_space<vmem>>, vector<1x128xf32>
    %cst_9 = arith.constant dense<0.000000e+00> : vector<16x128xf32>
    %10 = tpu.matmul %7, %8, %cst_9 {dimension_numbers = #tpu.dot_dimension_numbers<[1], [0], [0], [1], [0, 0, 1, 1], [], []>} : vector<16x128xbf16>, vector<128x128xbf16>, vector<16x128xf32> -> vector<16x128xf32>
    %11 = vector.broadcast %9 : vector<1x128xf32> to vector<16x128xf32>
    %12 = arith.addf %10, %11 : vector<16x128xf32>
    %13 = math.tanh %12 : vector<16x128xf32>
    %c0_10 = arith.constant 0 : index
    %c0_11 = arith.constant 0 : index
    %14 = vector.load %arg6[%c0_10, %c0_11] : memref<16x128xf32, #tpu.memory_space<vmem>>, vector<16x128xf32>
    tpu.vector_store %arg6[%c0_10, %c0_11], %13 {strides = array<i32>} : memref<16x128xf32, #tpu.memory_space<vmem>>, vector<16x128xf32>,
    return
  }
  func.func @transform_0(%arg0: i32) -> (i32, i32) {
    %c0_i32 = arith.constant 0 : i32
    %c0_i32_0 = arith.constant 0 : i32
    return %arg0, %c0_i32 : i32, i32
  }
  func.func @transform_1(%arg0: i32) -> (i32, i32) {
    %c0_i32 = arith.constant 0 : i32
    %c0_i32_0 = arith.constant 0 : i32
    %c0_i32_1 = arith.constant 0 : i32
    return %c0_i32, %c0_i32_0 : i32, i32
  }
  func.func @transform_2(%arg0: i32) -> (i32, i32) {
    %c0_i32 = arith.constant 0 : i32
    %c0_i32_0 = arith.constant 0 : i32
    %c0_i32_1 = arith.constant 0 : i32
    return %c0_i32, %c0_i32_0 : i32, i32
  }
  func.func @transform_3(%arg0: i32) -> (i32, i32) {
    %c0_i32 = arith.constant 0 : i32
    %c0_i32_0 = arith.constant 0 : i32
    %c0_i32_1 = arith.constant 0 : i32
    return %c0_i32, %c0_i32_0 : i32, i32
  }
  func.func @transform_4(%arg0: i32) -> (i32, i32) {
    %c0_i32 = arith.constant 0 : i32
    %c0_i32_0 = arith.constant 0 : i32
    %c0_i32_1 = arith.constant 0 : i32
    return %c0_i32, %c0_i32_0 : i32, i32
  }
  func.func @transform_5(%arg0: i32) -> (i32, i32) {
    %c0_i32 = arith.constant 0 : i32
    %c0_i32_0 = arith.constant 0 : i32
    return %arg0, %c0_i32 : i32, i32
  }
}

</mosaic_0001>

<bundles_post_ra>
// kernel: tpu_custom_call.1
= control target key start
LH: loop header
LB: loop body
LE: loop exit
PB: predicated region body
PF: predicated region fallthrough
CT: control target
= control target key end

     0   :  { %10 = vsyncpa [#allocation3], 0  ;;  %s455_s0 = inlined_call_operand.hbm [shape: bf16[16,32], index: 0, kind: input, shape index: {}]   ;;  %s456_s1 = inlined_call_operand.hbm [shape: bf16[32,128], index: 1, kind: input, shape index: {}]   ;;  %s457_s2 = inlined_call_operand.vmem [shape: f32[1,128], index: 2, kind: input, shape index: {}]   ;;  %s458_s3 = inlined_call_operand.hbm [shape: bf16[128,128], index: 3, kind: input, shape index: {}]   ;;  %s459_s4 = inlined_call_operand.vmem [shape: f32[1,128], index: 4, kind: input, shape index: {}]   ;;  %s460_s5 = inlined_call_operand.hbm [shape: f32[16,128], index: 5, kind: output, shape index: {}]  }
   0x1   :  { %11 = vsyncpa [#allocation6], 0 }
   0x2   :  { %12 = vsyncpa [#allocation4], 0  ;;  %s30_s20 = sshll.u32 %s456_s1, 4  ;;  %s399_s21 = smov [#allocation5]   ;;  %s31_s20 = int_to_ptr.hbm [resolvable:$true] %s30_s20 }
   0x3   :  { %s32_s22 = sshll.u32 %s399_s21, 4  ;;  %s17_s25 = sshll.u32 %s455_s0, 4  ;;  %s33_s22 = int_to_ptr.vmem [resolvable:$true] %s32_s22  ;;  %s18_s25 = int_to_ptr.hbm [resolvable:$true] %s17_s25 }
   0x4   :  { %s400_s26 = smov 64   ;;  %s401_s27 = smov 4  }
   0x5   :  { %38 = dma.hbm_to_vmem [thread:$0]  %s31_s20, 256, %s33_s22, [#allocation6], %s400_s26, %s400_s26, %s401_s27  }
   0x6   :  { %s402_s28 = smov [#allocation2]   ;;  %s45_s7 = sshll.u32 %s458_s3, 4  ;;  %s46_s7 = int_to_ptr.hbm [resolvable:$true] %s45_s7 }
   0x7   :  { %s19_s29 = sshll.u32 %s402_s28, 4  ;;  %s403_s1 = smov [#allocation7]   ;;  %s20_s29 = int_to_ptr.vmem [resolvable:$true] %s19_s29 }
   0x8   :  { %25 = dma.hbm_to_vmem [thread:$0]  %s18_s25, 128, %s20_s29, [#allocation3], %s400_s26, %s400_s26, %s401_s27  }
   0x9   :  { %s47_s8 = sshll.u32 %s403_s1, 4  ;;  %s48_s8 = int_to_ptr.vmem [resolvable:$true] %s47_s8 }
   0xa   :  { %53 = dma.hbm_to_vmem [thread:$0]  %s46_s7, 1024, %s48_s8, [#allocation6], %s400_s26, %s400_s26, %s401_s27  }
   0xb   :  { %393 = dma.done.wait [#allocation3], 128  }
   0xc   :  { %394 = vsyncadd [#allocation3], 4294967168 }
   0xd   :  { %395 = dma.done.wait [#allocation6], 1280  }
   0xe   :  { %396 = vsyncadd [#allocation6], 4294966016  ;;  %v270_v0 = vld [vmem:[#allocation5 + $0x8] sm:$0xff]  ;;  %v269_v2 = vld [vmem:[#allocation5] sm:$0xff]  ;;  %vm96_vm0 = vcmask 261120   ;;  %s209_s14 = sshll.u32 %s460_s5, 4  ;;  %s210_s14 = int_to_ptr.hbm [resolvable:$true] %s209_s14 }
   0xf   :  { %v278_v1 = vld [vmem:[#allocation7 + $0x38] sm:$0xff]  ;;  %106 = vmatpush.bf16.msra.mxu0 %v270_v0  ;;  %v277_v3 = vld [vmem:[#allocation7 + $0x30] sm:$0xff]  ;;  %v268_v4 = vld [vmem:[#allocation2] sm:$0xff]  ;;  %s405_s15 = smov 128  }
  0x10   :  { %185 = vmatpush.bf16.msra.mxu1 %v278_v1  ;;  %v276_v5 = vld [vmem:[#allocation7 + $0x28] sm:$0xff]  ;;  %v275_v6 = vld [vmem:[#allocation7 + $0x20] sm:$0xff]  ;;  %v274_v7 = vld [vmem:[#allocation7 + $0x18] sm:$0xff] }
  0x11   :  { %v273_v8 = vld [vmem:[#allocation7 + $0x10] sm:$0xff]  ;;  %v272_v9 = vld [vmem:[#allocation7 + $0x8] sm:$0xff]  ;;  %v271_v10 = vld [vmem:[#allocation7] sm:$0xff] }
  0x12   :  { %v287_v12 = vld [vmem:[%s457_s2] ss:$0 sm:$0xff]  ;;  %s404_s2 = smov [#allocation8]  }
  0x13   :  { %107 = vmatpush.bf16.msra.mxu0 %v269_v2  ;;  %v288_v19 = vld [vmem:[%s459_s4] ss:$0 sm:$0xff]  ;;  %s207_s11 = sshll.u32 %s404_s2, 4  ;;  %s406_s4 = smov 8   ;;  %s208_s11 = int_to_ptr.vmem [resolvable:$true] %s207_s11 }
  0x14   :  { %186 = vmatpush.bf16.msra.mxu1 %v277_v3 }
  0x16   :  { %235 = vmatmul.msk.bf16.vlgmr.msra.gmra.mxu0 %vm96_vm0, %v268_v4 }
  0x18   :  { %187 = vmatpush.bf16.msra.mxu1 %v276_v5 }
  0x1c   :  { %188 = vmatpush.bf16.msra.mxu1 %v275_v6 }
  0x20   :  { %189 = vmatpush.bf16.msra.mxu1 %v274_v7 }
  0x24   :  { %190 = vmatpush.bf16.msra.mxu1 %v273_v8 }
  0x28   :  { %191 = vmatpush.bf16.msra.mxu1 %v272_v9 }
  0x2c   :  { %192 = vmatpush.bf16.msra.mxu1 %v271_v10 }
  0x93   :  { %v109_v11 = vpop.f32.mrf.mxu0 }
  0x94   :  { %v110_v13 = vadd.f32 %v287_v12, %v109_v11 }
  0x96   :  { %289 = vtanh.f32 %v110_v13 }
  0x9b   :  { %v111_v14 = vpop.f32.mrf.mxu0 }
  0x9c   :  { %v112_v15 = vadd.f32 %v287_v12, %v111_v14  ;;  %v290_v16 = vpop.eup %289 }
  0x9e   :  { %291 = vtanh.f32 %v112_v15 }
  0xa4   :  { %v292_v17 = vpop.eup %291 }
  0xa5   :  { %v116_v18 = vpack.c.bf16 %v292_v17, %v290_v16 }
  0xa7   :  { %193 = vmatmul.bf16.vlgmr.msra.gmra.mxu1 %v116_v18 }
 0x124   :  { %v194_v20 = vpop.f32.mrf.mxu1 }
 0x125   :  { %v195_v21 = vadd.f32 %v288_v19, %v194_v20 }
 0x127   :  { %293 = vtanh.f32 %v195_v21 }
 0x12c   :  { %v196_v22 = vpop.f32.mrf.mxu1 }
 0x12d   :  { %v294_v23 = vpop.eup %293  ;;  %v197_v24 = vadd.f32 %v288_v19, %v196_v22 }
 0x12e   :  { %201 = vst [vmem:[#allocation8] sm:$0xff] %v294_v23 }
 0x12f   :  { %295 = vtanh.f32 %v197_v24 }
 0x135   :  { %v296_v25 = vpop.eup %295 }
 0x136   :  { %202 = vst [vmem:[#allocation8 + $0x8] sm:$0xff] %v296_v25 }
 0x137   :  { %215 = dma.vmem_to_hbm [thread:$0]  %s208_s11, 256, %s210_s14, [#allocation4], %s405_s15, %s405_s15, %s406_s4  }
 0x138   :  { %397 = dma.done.wait [#allocation4], 256  }
 0x139   :  { %398 = vsyncadd [#allocation4], 4294967040 }
 0x13a   :  { %220 = vsyncpa [#allocation3], 1 }
 0x13b   :  { %221 = vsyncpa [#allocation6], 1 }
 0x13c   :  { %222 = vsyncpa [#allocation4], 1 }

</bundles_post_ra>
